<compile_context>
chip_gen: v6e
topology: v6e:2x2x1
jax: 0.10.0
libtpu: 0.0.40
codegen_flags: <defaults>
</compile_context>

<pallas_src>
import jax
import jax.numpy as jnp
from jax.experimental import pallas as pl
from jax.experimental.pallas import tpu as pltpu


def _round_up(n: int, m: int) -> int:
    return ((n + m - 1) // m) * m


def _use_bf16_activation() -> bool:
    """bf16 EUP/VPU exists on v6e / v7x; keep f32 elementwise elsewhere."""
    try:
        kind = jax.devices()[0].device_kind.lower()
        return ("v6" in kind) or ("v7" in kind)
    except Exception:  # pragma: no cover - conservative fallback
        return False


def _make_kernel(act_dtype):
    def kernel(x_ref, wT_ref, fcwT_ref, fcb_ref, o_ref):
        # (TB, I) @ (I, H) -> (TB, H): bf16 MXU operands, f32 accumulate.
        h = jnp.dot(x_ref[...], wT_ref[...], preferred_element_type=jnp.float32)
        # tanh on the EUP (bf16 on v6e/v7x, f32 on v5e); alpha is already folded
        # into fcwT, so no extra VPU broadcast-multiply here.
        z = jnp.tanh(h.astype(act_dtype)).astype(jnp.bfloat16)
        # (TB, H) @ (H, C) -> (TB, C), bias added on the f32 result.
        out = fcb_ref[...] + jnp.dot(
            z, fcwT_ref[...], preferred_element_type=jnp.float32
        )
        o_ref[...] = out.astype(o_ref.dtype)

    return kernel


def make_liquid_nn_forward(w, alpha, fc_w, fc_b, *, block_b: int = 1024):
    """Returns a jitted forward(x) closure with padded weights precomputed once.

    w: [H, I]; alpha: [H]; fc_w: [C, H]; fc_b: [C].  forward(x: [B, I]) -> [B, C].
    """
    H, I = w.shape
    C = fc_w.shape[0]
    f32, bf16 = jnp.float32, jnp.bfloat16

    I_p = _round_up(I, 128)
    H_p = _round_up(H, 128)
    C_p = _round_up(C, 128)

    act_dtype = bf16 if _use_bf16_activation() else f32
    kernel = _make_kernel(act_dtype)

    # ---- one-time layout plumbing (hoisted out of the per-call path) ----
    wT_p = jnp.zeros((I_p, H_p), bf16).at[:I, :H].set(w.T.astype(bf16))
    # Fold alpha into the second matmul's weights (f32 scale, then bf16 cast).
    fcw_scaled = alpha.astype(f32)[:, None] * fc_w.T.astype(f32)       # (H, C)
    fcwT_p = jnp.zeros((H_p, C_p), bf16).at[:H, :C].set(fcw_scaled.astype(bf16))
    fcb_p = jnp.zeros((1, C_p), f32).at[0, :C].set(fc_b.astype(f32))

    @jax.jit
    def forward(x):
        B = x.shape[0]

        # Batch tile: aim for >= 2 grid steps (megacore on v7x) while keeping
        # TB a multiple of 8; a single full-extent block is used for tiny B.
        target = max(8, _round_up(pl.cdiv(B, 2), 8))
        TB = min(block_b, target, _round_up(B, 8))
        if TB >= B:
            TB = B
        grid = (pl.cdiv(B, TB),)

        # Only lane-dim (I) padding of x; batch rows are left unpadded and the
        # partial last block is masked by the pipeline.
        x_p = x.astype(bf16)
        if I_p != I:
            x_p = jnp.pad(x_p, ((0, 0), (0, I_p - I)))

        # Advisory cost hint for XLA's scheduler around the custom call.
        cost = pl.CostEstimate(
            flops=2 * B * (I * H + H * C),
            transcendentals=B * H,
            bytes_accessed=(B * I_p * 2 + I_p * H_p * 2 + H_p * C_p * 2
                            + C_p * 4 + B * C_p * 4),
        )

        # VMEM budget: 2x double-buffered x/out tiles + resident weights (x2
        # buffers, conservatively).  Only raise the scoped limit when needed.
        vmem_est = 2 * (TB * I_p * 2 + TB * C_p * 4
                        + I_p * H_p * 2 + H_p * C_p * 2 + C_p * 4) + (1 << 20)
        vmem_limit = vmem_est if vmem_est > (30 << 20) else None

        out_p = pl.pallas_call(
            kernel,
            out_shape=jax.ShapeDtypeStruct((B, C_p), f32),
            grid=grid,
            in_specs=[
                pl.BlockSpec((TB, I_p), lambda i: (i, 0)),    # x: batch-tiled
                pl.BlockSpec((I_p, H_p), lambda i: (0, 0)),   # w^T: resident
                pl.BlockSpec((H_p, C_p), lambda i: (0, 0)),   # alpha*fc_w^T: resident
                pl.BlockSpec((1, C_p), lambda i: (0, 0)),     # fc_b: resident
            ],
            out_specs=pl.BlockSpec((TB, C_p), lambda i: (i, 0)),
            compiler_params=pltpu.CompilerParams(
                dimension_semantics=("parallel",),   # megacore-shard batch on v7x
                vmem_limit_bytes=vmem_limit,
            ),
            cost_estimate=cost,
        )(x_p, wT_p, fcwT_p, fcb_p)

        return out_p[:, :C]

    return forward


def reference_forward_f32(x, w, alpha, fc_w, fc_b):
    z = jnp.tanh(x @ w.T) * alpha
    return z @ fc_w.T + fc_b


def reference_forward_matched(x, w, alpha, fc_w, fc_b, act_dtype):
    """Mirrors the kernel numerics: bf16 MXU operands, f32 accumulate,
    tanh in act_dtype, alpha folded into the bf16 second-matmul weights."""
    f32, bf16 = jnp.float32, jnp.bfloat16
    h = jnp.dot(x.astype(bf16), w.T.astype(bf16), preferred_element_type=f32)
    z = jnp.tanh(h.astype(act_dtype)).astype(bf16)
    fcwT = (alpha.astype(f32)[:, None] * fc_w.T.astype(f32)).astype(bf16)
    return jnp.dot(z, fcwT, preferred_element_type=f32) + fc_b.astype(f32)


if __name__ == "__main__":
    # Shapes implied by the module: x is [batch, input_size].
    batch, input_size, hidden_size, num_classes = 8, 16, 32, 8

    key = jax.random.PRNGKey(0)
    k_x, k_w, k_a, k_fw, k_fb = jax.random.split(key, 5)

    x = jax.random.normal(k_x, (batch, input_size), dtype=jnp.float32)

    # Deterministic parameter init mirroring the PyTorch __init__ distributions.
    w = jax.random.normal(k_w, (hidden_size, input_size), dtype=jnp.float32)   # randn
    alpha = jax.random.uniform(k_a, (hidden_size,), dtype=jnp.float32)         # rand
    bound = 1.0 / jnp.sqrt(hidden_size)
    fc_w = jax.random.uniform(k_fw, (num_classes, hidden_size),
                              minval=-bound, maxval=bound, dtype=jnp.float32)
    fc_b = jax.random.uniform(k_fb, (num_classes,),
                              minval=-bound, maxval=bound, dtype=jnp.float32)

    forward = make_liquid_nn_forward(w, alpha, fc_w, fc_b)
    out = jax.block_until_ready(forward(x))

    assert out.shape == (batch, num_classes)

    # Tight check vs a reference with the kernel's exact mixed-precision math.
    act_dtype = jnp.bfloat16 if _use_bf16_activation() else jnp.float32
    ref_match = reference_forward_matched(x, w, alpha, fc_w, fc_b, act_dtype)
    assert jnp.allclose(out, ref_match, atol=2e-3, rtol=2e-3), \
        "mismatch vs matched-precision reference"

    # Loose sanity check vs the pure-f32 PyTorch-equivalent math.
    ref_f32 = reference_forward_f32(x, w, alpha, fc_w, fc_b)
    assert jnp.allclose(out, ref_f32, atol=1e-1, rtol=1e-1), \
        "mismatch vs f32 reference"

    print("KERNEL_OK")
</pallas_src>

<mosaic_0001>
module attributes {stable_mosaic.version = 11 : i64} {
  func.func @kernel(%arg0: i32, %arg1: memref<8x128xbf16, #tpu.memory_space<vmem>>, %arg2: memref<128x128xbf16, #tpu.memory_space<vmem>>, %arg3: memref<128x128xbf16, #tpu.memory_space<vmem>>, %arg4: memref<1x128xf32, #tpu.memory_space<vmem>>, %arg5: memref<8x128xf32, #tpu.memory_space<vmem>>) attributes {dimension_semantics = [#tpu.dimension_semantics<parallel>], iteration_bounds = array<i64: 1>, scalar_prefetch = 0 : i64, scratch_operands = 0 : i64, tpu.core_type = #tpu.core_type<tc>, window_params = [{transform_indices = @transform_0, window_bounds = array<i64: 8, 128>}, {pipeline_mode = #tpu.pipeline_mode<synchronous>, transform_indices = @transform_1, window_bounds = array<i64: 128, 128>}, {pipeline_mode = #tpu.pipeline_mode<synchronous>, transform_indices = @transform_2, window_bounds = array<i64: 128, 128>}, {pipeline_mode = #tpu.pipeline_mode<synchronous>, transform_indices = @transform_3, window_bounds = array<i64: 1, 128>}, {transform_indices = @transform_4, window_bounds = array<i64: 8, 128>}]} {
    %c0 = arith.constant 0 : index
    %c0_0 = arith.constant 0 : index
    %0 = vector.load %arg1[%c0, %c0_0] : memref<8x128xbf16, #tpu.memory_space<vmem>>, vector<8x128xbf16>
    %c0_1 = arith.constant 0 : index
    %c0_2 = arith.constant 0 : index
    %1 = vector.load %arg2[%c0_1, %c0_2] : memref<128x128xbf16, #tpu.memory_space<vmem>>, vector<128x128xbf16>
    %cst = arith.constant dense<0.000000e+00> : vector<8x128xf32>
    %2 = tpu.matmul %0, %1, %cst {dimension_numbers = #tpu.dot_dimension_numbers<[1], [0], [0], [1], [0, 0, 1, 1], [], []>} : vector<8x128xbf16>, vector<128x128xbf16>, vector<8x128xf32> -> vector<8x128xf32>
    %3 = math.tanh %2 : vector<8x128xf32>
    %4 = arith.truncf %3 : vector<8x128xf32> to vector<8x128xbf16>
    %c0_3 = arith.constant 0 : index
    %c0_4 = arith.constant 0 : index
    %5 = vector.load %arg4[%c0_3, %c0_4] : memref<1x128xf32, #tpu.memory_space<vmem>>, vector<1x128xf32>
    %c0_5 = arith.constant 0 : index
    %c0_6 = arith.constant 0 : index
    %6 = vector.load %arg3[%c0_5, %c0_6] : memref<128x128xbf16, #tpu.memory_space<vmem>>, vector<128x128xbf16>
    %cst_7 = arith.constant dense<0.000000e+00> : vector<8x128xf32>
    %7 = tpu.matmul %4, %6, %cst_7 {dimension_numbers = #tpu.dot_dimension_numbers<[1], [0], [0], [1], [0, 0, 1, 1], [], []>} : vector<8x128xbf16>, vector<128x128xbf16>, vector<8x128xf32> -> vector<8x128xf32>
    %8 = vector.broadcast %5 : vector<1x128xf32> to vector<8x128xf32>
    %9 = arith.addf %8, %7 : vector<8x128xf32>
    %c0_8 = arith.constant 0 : index
    %c0_9 = arith.constant 0 : index
    %10 = vector.load %arg5[%c0_8, %c0_9] : memref<8x128xf32, #tpu.memory_space<vmem>>, vector<8x128xf32>
    tpu.vector_store %arg5[%c0_8, %c0_9], %9 {strides = array<i32>} : memref<8x128xf32, #tpu.memory_space<vmem>>, vector<8x128xf32>,
    return
  }
  func.func @transform_0(%arg0: i32) -> (i32, i32) {
    %c0_i32 = arith.constant 0 : i32
    %c0_i32_0 = arith.constant 0 : i32
    return %arg0, %c0_i32 : i32, i32
  }
  func.func @transform_1(%arg0: i32) -> (i32, i32) {
    %c0_i32 = arith.constant 0 : i32
    %c0_i32_0 = arith.constant 0 : i32
    %c0_i32_1 = arith.constant 0 : i32
    return %c0_i32, %c0_i32_0 : i32, i32
  }
  func.func @transform_2(%arg0: i32) -> (i32, i32) {
    %c0_i32 = arith.constant 0 : i32
    %c0_i32_0 = arith.constant 0 : i32
    %c0_i32_1 = arith.constant 0 : i32
    return %c0_i32, %c0_i32_0 : i32, i32
  }
  func.func @transform_3(%arg0: i32) -> (i32, i32) {
    %c0_i32 = arith.constant 0 : i32
    %c0_i32_0 = arith.constant 0 : i32
    %c0_i32_1 = arith.constant 0 : i32
    return %c0_i32, %c0_i32_0 : i32, i32
  }
  func.func @transform_4(%arg0: i32) -> (i32, i32) {
    %c0_i32 = arith.constant 0 : i32
    %c0_i32_0 = arith.constant 0 : i32
    return %arg0, %c0_i32 : i32, i32
  }
}

</mosaic_0001>

<bundles_post_ra>
// kernel: forward.1
= control target key start
LH: loop header
LB: loop body
LE: loop exit
PB: predicated region body
PF: predicated region fallthrough
CT: control target
= control target key end

     0   :  { %9 = vsyncpa [#allocation3], 0  ;;  %s496_s0 = inlined_call_operand.vmem [shape: bf16[8,128], index: 0, kind: input, shape index: {}]   ;;  %s497_s1 = inlined_call_operand.hbm [shape: bf16[128,128], index: 1, kind: input, shape index: {}]   ;;  %s498_s2 = inlined_call_operand.hbm [shape: bf16[128,128], index: 2, kind: input, shape index: {}]   ;;  %s499_s3 = inlined_call_operand.vmem [shape: f32[1,128], index: 3, kind: input, shape index: {}]   ;;  %s500_s4 = inlined_call_operand.hbm [shape: f32[8,128], index: 4, kind: output, shape index: {}]  }
   0x1   :  { %10 = vsyncpa [#allocation6], 0 }
   0x2   :  { %11 = vsyncpa [#allocation4], 0  ;;  %s449_s15 = smov [#allocation2]  }
   0x3   :  { %s19_s16 = sshll.u32 %s449_s15, 4  ;;  %s20_s16 = int_to_ptr.vmem [resolvable:$true] %s19_s16 }
   0x4   :  { %s391_s17 = scalar_lea.vmem %s20_s16, 1024  ;;  %p396_p1 = scmp.lt.s32.totalorder %s20_s16, %s20_s16 }
   0x5   :  { %p392_p0 = scmp.ne.s32.totalorder %s20_s16, %s391_s17  ;;  %p397_p2 = scmp.lt.s32.totalorder %s391_s17, %s391_s17 }
   0x7   :  { %p398_p3 = por %p397_p2, %p396_p1 }
   0x9   :  { %p399_p4 = pnand %p398_p3, %p392_p0 }
   0xb   :  { %402 = shalt.err (!%p399_p4)
}
   0xc   :  { %s450_s18 = smov 64   ;;  %s451_s19 = smov 4  }
   0xd   :  { %25 = dma.hbm_to_vmem [thread:$0]  %s497_s1, 1024, %s20_s16, [#allocation3], %s450_s18, %s450_s18, %s451_s19  }
   0xe   :  { %s452_s22 = smov [#allocation5]  }
   0xf   :  { %s31_s23 = sshll.u32 %s452_s22, 4  ;;  %s32_s23 = int_to_ptr.vmem [resolvable:$true] %s31_s23 }
  0x10   :  { %s411_s24 = scalar_lea.vmem %s32_s23, 1024  ;;  %p416_p6 = scmp.lt.s32.totalorder %s32_s23, %s32_s23 }
  0x11   :  { %p412_p5 = scmp.ne.s32.totalorder %s32_s23, %s411_s24  ;;  %p417_p7 = scmp.lt.s32.totalorder %s411_s24, %s411_s24 }
  0x13   :  { %p418_p8 = por %p417_p7, %p416_p6 }
  0x15   :  { %p419_p9 = pnand %p418_p8, %p412_p5 }
  0x17   :  { %422 = shalt.err (!%p419_p9)
}
  0x18   :  { %37 = dma.hbm_to_vmem [thread:$0]  %s498_s2, 1024, %s32_s23, [#allocation6], %s450_s18, %s450_s18, %s451_s19  }
  0x19   :  { %443 = dma.done.wait [#allocation3], 1024  }
  0x1a   :  { %444 = vsyncadd [#allocation3], 4294966272 }
  0x1b   :  { %445 = dma.done.wait [#allocation6], 1024  }
  0x1c   :  { %446 = vsyncadd [#allocation6], 4294966272  ;;  %v453_v0 = vmov 0.0   ;;  %vm454_vm0 = vmmov 0   ;;  %v365_v1 = vld [vmem:[#allocation2 + $0x38] sm:$0xff]   ;;  %v366_v2 = vld [vmem:[#allocation2 + $0x30] sm:$0xff]  }
  0x1d   :  { %318 = vmatprep.subr.bf16.mxu0 %v453_v0  ;;  %334 = vmatprep.mubr.msk.bf16.mxu0 %vm454_vm0, %v453_v0  ;;  %v367_v3 = vld [vmem:[#allocation2 + $0x28] sm:$0xff]   ;;  %v373_v4 = vld [vmem:[#allocation5 + $0x38] sm:$0xff]   ;;  %v368_v5 = vld [vmem:[#allocation2 + $0x20] sm:$0xff]   ;;  %s455_s28 = smov [#allocation7]  }
  0x1e   :  { %338 = vmatprep.subr.bf16.mxu1 %v453_v0  ;;  %354 = vmatprep.mubr.msk.bf16.mxu1 %vm454_vm0, %v453_v0  ;;  %v374_v6 = vld [vmem:[#allocation5 + $0x30] sm:$0xff]   ;;  %v369_v7 = vld [vmem:[#allocation2 + $0x18] sm:$0xff]   ;;  %v375_v8 = vld [vmem:[#allocation5 + $0x28] sm:$0xff]   ;;  %s273_s29 = sshll.u32 %s455_s28, 4  ;;  %s274_s29 = int_to_ptr.vmem [resolvable:$true] %s273_s29 }
  0x1f   :  { %319 = vmatpush3.bf16.msra.mxu0 %v365_v1  ;;  %339 = vmatpush3.bf16.msra.mxu1 %v373_v4  ;;  %v370_v9 = vld [vmem:[#allocation2 + $0x10] sm:$0xff]   ;;  %v376_v10 = vld [vmem:[#allocation5 + $0x20] sm:$0xff]   ;;  %v371_v11 = vld [vmem:[#allocation2 + $0x8] sm:$0xff]   ;;  %s423_s30 = scalar_lea.vmem %s274_s29, 128  ;;  %p428_p11 = scmp.lt.s32.totalorder %s274_s29, %s274_s29 }
  0x20   :  { %320 = vmatprep.subr.bf16.mxu0 %v453_v0  ;;  %340 = vmatprep.subr.bf16.mxu1 %v453_v0  ;;  %v372_v12 = vld [vmem:[#allocation2] sm:$0xff]   ;;  %v377_v14 = vld [vmem:[#allocation5 + $0x18] sm:$0xff]   ;;  %v378_v15 = vld [vmem:[#allocation5 + $0x10] sm:$0xff]   ;;  %p424_p10 = scmp.ne.s32.totalorder %s274_s29, %s423_s30  ;;  %p429_p12 = scmp.lt.s32.totalorder %s423_s30, %s423_s30 }
  0x21   :  { %v47_v13 = vld [vmem:[%s496_s0] sm:$0xf]  ;;  %v379_v16 = vld [vmem:[#allocation5 + $0x8] sm:$0xff]  }
  0x22   :  { %v380_v17 = vld [vmem:[#allocation5] sm:$0xff]   ;;  %p430_p13 = por %p429_p12, %p428_p11 }
  0x23   :  { %321 = vmatpush3.bf16.msra.mxu0 %v366_v2  ;;  %341 = vmatpush3.bf16.msra.mxu1 %v374_v6  ;;  %v299_v24 = vld [vmem:[%s499_s3] ss:$0 sm:$0xff] }
  0x24   :  { %322 = vmatprep.subr.bf16.mxu0 %v453_v0  ;;  %342 = vmatprep.subr.bf16.mxu1 %v453_v0  ;;  %p431_p0 = pnand %p430_p13, %p424_p10 }
  0x27   :  { %323 = vmatpush3.bf16.msra.mxu0 %v367_v3  ;;  %343 = vmatpush3.bf16.msra.mxu1 %v375_v8 }
  0x28   :  { %324 = vmatprep.subr.bf16.mxu0 %v453_v0  ;;  %344 = vmatprep.subr.bf16.mxu1 %v453_v0 }
  0x2b   :  { %325 = vmatpush3.bf16.msra.mxu0 %v368_v5  ;;  %345 = vmatpush3.bf16.msra.mxu1 %v376_v10 }
  0x2c   :  { %326 = vmatprep.subr.bf16.mxu0 %v453_v0  ;;  %346 = vmatprep.subr.bf16.mxu1 %v453_v0 }
  0x2f   :  { %327 = vmatpush3.bf16.msra.mxu0 %v369_v7  ;;  %347 = vmatpush3.bf16.msra.mxu1 %v377_v14 }
  0x30   :  { %328 = vmatprep.subr.bf16.mxu0 %v453_v0  ;;  %348 = vmatprep.subr.bf16.mxu1 %v453_v0 }
  0x33   :  { %329 = vmatpush3.bf16.msra.mxu0 %v370_v9  ;;  %349 = vmatpush3.bf16.msra.mxu1 %v378_v15 }
  0x34   :  { %330 = vmatprep.subr.bf16.mxu0 %v453_v0  ;;  %350 = vmatprep.subr.bf16.mxu1 %v453_v0 }
  0x37   :  { %331 = vmatpush3.bf16.msra.mxu0 %v371_v11  ;;  %351 = vmatpush3.bf16.msra.mxu1 %v379_v16 }
  0x38   :  { %332 = vmatprep.subr.bf16.mxu0 %v453_v0  ;;  %352 = vmatprep.subr.bf16.mxu1 %v453_v0 }
  0x3b   :  { %333 = vmatpush3.bf16.msra.mxu0 %v372_v12  ;;  %353 = vmatpush3.bf16.msra.mxu1 %v380_v17 }
  0x3e   :  { %335 = vmatmul.mubr.bf16.vlgmr.msra.gmra.mxu0 %v47_v13 }
  0xfe   :  { %v146_v18 = vpop.f32.mrf.mxu0 }
  0xff   :  { %381 = vtanh.f32 %v146_v18 }
 0x100   :  { %v336_v19 = vpop.f32.mrf.mxu0 }
 0x102   :  { %v149_v20 = vpop.f32.mrf.mxu0 }
 0x104   :  { %v337_v21 = vpop.f32.mrf.mxu0 }
 0x10c   :  { %v382_v22 = vpop.eup %381 }
 0x10d   :  { %v153_v23 = vpack.c.bf16 %v382_v22, %v382_v22 }
 0x10f   :  { %355 = vmatmul.mubr.bf16.vlgmr.msra.gmra.mxu1 %v153_v23 }
 0x1cf   :  { %v253_v25 = vpop.f32.mrf.mxu1 }
 0x1d0   :  { %v265_v26 = vadd.f32 %v299_v24, %v253_v25 }
 0x1d1   :  { %v356_v27 = vpop.f32.mrf.mxu1 }
 0x1d2   :  { %266 = vst [vmem:[#allocation7] sm:$0xff] %v265_v26 }
 0x1d3   :  { %v256_v28 = vpop.f32.mrf.mxu1 }
 0x1d4   :  { %434 = shalt.err (!%p431_p0)
}
 0x1d5   :  { %276 = dma.vmem_to_hbm [thread:$0]  %s274_s29, 128, %s500_s4, [#allocation4]   ;;  %v357_v29 = vpop.f32.mrf.mxu1 }
 0x1d6   :  { %447 = dma.done.wait [#allocation4], 128  }
 0x1d7   :  { %448 = vsyncadd [#allocation4], 4294967168 }
 0x1d8   :  { %280 = vsyncpa [#allocation3], 1 }
 0x1d9   :  { %281 = vsyncpa [#allocation6], 1 }
 0x1da   :  { %282 = vsyncpa [#allocation4], 1 }

</bundles_post_ra>
